<compile_context>
chip_gen: v6e
topology: v6e:2x2x1
jax: 0.10.0
libtpu: 0.0.40
codegen_flags: <defaults>
</compile_context>

<pallas_src>
import functools

import jax
import jax.numpy as jnp
from jax import lax
from jax.experimental import pallas as pl
from jax.experimental.pallas import tpu as pltpu

_EPS = 1e-6                 # matches F.pairwise_distance default eps
_MiB = 1024 * 1024


# --------------------------------------------------------------------------- #
# Kernel
# --------------------------------------------------------------------------- #
def _contrastive_loss_kernel(x1_ref, x2_ref, lab_ref, out_ref, acc_ref, *,
                             margin, inv_n, batch, batch_tile,
                             steps_per_core, needs_mask):
    c = pl.program_id(0)          # parallel (core) axis
    i = pl.program_id(1)          # arbitrary (reduction) axis

    @pl.when(i == 0)
    def _():
        acc_ref[...] = jnp.zeros_like(acc_ref)

    x1 = x1_ref[...].astype(jnp.float32)                   # (TB, D)
    x2 = x2_ref[...].astype(jnp.float32)                   # (TB, D)
    lab = lab_ref[...]                                      # (TB, 1) f32

    diff = x1 - x2 + _EPS
    sq = jnp.sum(diff * diff, axis=-1, keepdims=True)       # (TB, 1)  ||.||^2
    dist = jnp.sqrt(sq)                                      # EUP slot
    hinge = jnp.maximum(margin - dist, 0.0)
    # sq == dist**2 up to last-ulp rounding; use it directly for the
    # similar-pair term (avoids sqrt-then-square).
    per_sample = (1.0 - lab) * sq + lab * (hinge * hinge)    # (TB, 1)

    if needs_mask:
        # Ragged tail and/or duplicated (clamped) final step of the shorter
        # core: zero every row whose global index falls outside the batch.
        step = c * steps_per_core + i
        row0 = step * batch_tile
        rows = row0 + lax.broadcasted_iota(jnp.int32, per_sample.shape, 0)
        per_sample = jnp.where(rows < batch, per_sample, 0.0)

    # Scalar accumulate: the per-step cross-sublane reduce rides otherwise
    # idle VALU/XLU slots and keeps VMEM free for bigger input tiles.
    acc_ref[...] += jnp.sum(per_sample)

    @pl.when(i == steps_per_core - 1)
    def _():
        # Lane/sublane-aligned per-core output tile (clean unmasked store).
        out_ref[...] = jnp.broadcast_to(acc_ref[...] * inv_n, out_ref.shape)


# --------------------------------------------------------------------------- #
# Generation-aware sizing
# --------------------------------------------------------------------------- #
@functools.lru_cache(maxsize=1)
def _tpu_config():
    """Returns (tile_budget_bytes, vmem_limit_bytes, num_tensorcores)."""
    phys_vmem = 128 * _MiB
    try:
        info = pltpu.get_tpu_info()
        phys_vmem = int(getattr(info, "vmem_capacity_bytes", phys_vmem))
    except Exception:
        pass
    kind = ""
    try:
        kind = jax.devices()[0].device_kind.lower()
    except Exception:
        pass
    # v7x: 64 MiB VMEM per TensorCore and 2 TensorCores per chip.
    if "v7" in kind or phys_vmem <= 64 * _MiB:
        return 36 * _MiB, 48 * _MiB, 2
    # v5e / v6e: 128 MiB physical VMEM, single TensorCore.
    return 48 * _MiB, 64 * _MiB, 1


def _pick_batch_tile(B, D, itemsize, budget_bytes, emb_buffers=3, lab_buffers=2):
    """Largest row tile whose lane-padded VMEM footprint fits the budget."""
    lane_d = pl.cdiv(max(D, 1), 128) * 128                 # lane-padded width
    per_row = 2 * emb_buffers * lane_d * itemsize           # x1/x2 pipeline bufs
    per_row += lab_buffers * 128 * 4                        # (tile, 1) f32 label blocks
    per_row += 4 * lane_d * 4                               # f32 elementwise temporaries
    fixed = 256 * 1024                                      # acc / output tiles + slack
    cap = max((budget_bytes - fixed) // per_row, 8)
    cap = int(min(cap, 32768))
    if cap >= B:
        return B                                            # single full-batch block
    align = 8 if itemsize >= 4 else (16 if itemsize == 2 else 32)
    return max((cap // align) * align, align)


def _maybe_buffered_spec(block_shape, index_map, buffers):
    """BlockSpec with requested pipeline depth; falls back to the default (2)."""
    if buffers > 2 and hasattr(pl, "Buffered"):
        try:
            return pl.BlockSpec(block_shape, index_map,
                                pipeline_mode=pl.Buffered(buffers))
        except TypeError:
            pass
    return pl.BlockSpec(block_shape, index_map)


# --------------------------------------------------------------------------- #
# Wrapper
# --------------------------------------------------------------------------- #
def contrastive_loss(output1, output2, label, margin=1.0, *, batch_tile=None):
    """output1, output2: (B, D) float32/bfloat16; label: (B,). Scalar f32 loss."""
    B, D = output1.shape
    itemsize = output1.dtype.itemsize

    tile_budget, vmem_limit, n_tc = _tpu_config()

    if batch_tile is None:
        batch_tile = _pick_batch_tile(B, D, itemsize, tile_budget)
    batch_tile = int(min(batch_tile, B))
    if batch_tile != B:
        assert batch_tile % 8 == 0, "batch_tile must be a multiple of 8"

    total_steps = pl.cdiv(B, batch_tile)
    # Keep both v7x TensorCores streaming whenever there is more than one step
    # (odd step counts work via the clamped index map + row mask below).
    num_cores = 2 if (n_tc >= 2 and total_steps >= 2) else 1
    steps_per_core = pl.cdiv(total_steps, num_cores)
    needs_mask = (B % batch_tile != 0) or (num_cores * steps_per_core != total_steps)
    emb_buffers = 3 if steps_per_core >= 3 else 2

    label2d = label.reshape(B, 1).astype(jnp.float32)

    kernel = functools.partial(
        _contrastive_loss_kernel,
        margin=float(margin),
        inv_n=1.0 / float(B),
        batch=B,
        batch_tile=batch_tile,
        steps_per_core=steps_per_core,
        needs_mask=needs_mask,
    )

    def row_block_map(c, i):
        # Clamp so a duplicated final step on the shorter core stays in
        # bounds; its contribution is masked to zero inside the kernel.
        return (jnp.minimum(c * steps_per_core + i, total_steps - 1), 0)

    cost = pl.CostEstimate(
        flops=5 * B * D + 10 * B,
        transcendentals=B,                                   # one sqrt per row
        bytes_accessed=2 * B * D * itemsize + B * 4 + num_cores * 8 * 128 * 4,
    )

    # TODO(synk): for skinny D (< 128) lanes are only partially used; folding
    # k = 128 // D rows per vreg row plus a segmented lane reduce would let
    # tiles grow back to roofline size on v7x.  Left out for simplicity.
    partials = pl.pallas_call(
        kernel,
        out_shape=jax.ShapeDtypeStruct((num_cores * 8, 128), jnp.float32),
        grid_spec=pltpu.PrefetchScalarGridSpec(
            num_scalar_prefetch=0,
            grid=(num_cores, steps_per_core),
            in_specs=[
                _maybe_buffered_spec((batch_tile, D), row_block_map, emb_buffers),
                _maybe_buffered_spec((batch_tile, D), row_block_map, emb_buffers),
                # Per-step label sliver; its tiny DMA hides under the
                # multi-MB embedding DMAs.
                pl.BlockSpec((batch_tile, 1), row_block_map),
            ],
            out_specs=pl.BlockSpec((8, 128), lambda c, i: (c, 0)),
            scratch_shapes=[pltpu.VMEM((1, 1), jnp.float32)],
        ),
        compiler_params=pltpu.CompilerParams(
            dimension_semantics=("parallel", "arbitrary"),
            vmem_limit_bytes=vmem_limit,
        ),
        cost_estimate=cost,
    )(output1, output2, label2d)

    # One aligned (8, 128) tile per core, filled with that core's partial
    # (already scaled by 1/B); pick one lane per core and add them.
    return jnp.sum(partials[::8, 0])


# --------------------------------------------------------------------------- #
# Reference & self-test
# --------------------------------------------------------------------------- #
def _reference(output1, output2, label, margin=1.0):
    diff = output1.astype(jnp.float32) - output2.astype(jnp.float32) + _EPS
    d = jnp.sqrt(jnp.sum(diff * diff, axis=-1))
    lab = label.astype(jnp.float32)
    return jnp.mean((1.0 - lab) * d ** 2
                    + lab * jnp.clip(margin - d, 0.0, None) ** 2)


if __name__ == "__main__":
    keys = jax.random.split(jax.random.PRNGKey(0), 12)

    # 1) Small shape consistent with the module's forward: one step, one core.
    B, D = 8, 32
    o1 = jax.random.normal(keys[0], (B, D), dtype=jnp.float32)
    o2 = jax.random.normal(keys[1], (B, D), dtype=jnp.float32)
    lab = jax.random.bernoulli(keys[2], 0.5, (B,)).astype(jnp.float32)
    loss = contrastive_loss(o1, o2, lab, margin=1.0)
    jax.block_until_ready(loss)
    assert jnp.allclose(loss, _reference(o1, o2, lab, 1.0), rtol=1e-5, atol=1e-5)

    # 2) Multi-step (and, on v7x, dual-core) grid path.
    B2, D2 = 64, 32
    p1 = jax.random.normal(keys[3], (B2, D2), dtype=jnp.float32)
    p2 = jax.random.normal(keys[4], (B2, D2), dtype=jnp.float32)
    lab2 = jax.random.bernoulli(keys[5], 0.5, (B2,)).astype(jnp.float32)
    loss2 = contrastive_loss(p1, p2, lab2, margin=1.0, batch_tile=16)
    jax.block_until_ready(loss2)
    assert jnp.allclose(loss2, _reference(p1, p2, lab2, 1.0), rtol=1e-5, atol=1e-5)

    # 3) Ragged batch (B not a multiple of the tile) -> masked-tail path.
    B3, D3 = 50, 32
    r1 = jax.random.normal(keys[6], (B3, D3), dtype=jnp.float32)
    r2 = jax.random.normal(keys[7], (B3, D3), dtype=jnp.float32)
    lab3 = jax.random.bernoulli(keys[8], 0.5, (B3,)).astype(jnp.float32)
    loss3 = contrastive_loss(r1, r2, lab3, margin=1.0, batch_tile=16)
    jax.block_until_ready(loss3)
    assert jnp.allclose(loss3, _reference(r1, r2, lab3, 1.0), rtol=1e-5, atol=1e-5)

    # 4) bf16 embeddings streamed natively (half the HBM bytes, f32 math).
    B4, D4 = 48, 40
    q1 = jax.random.normal(keys[9], (B4, D4), dtype=jnp.bfloat16)
    q2 = jax.random.normal(keys[10], (B4, D4), dtype=jnp.bfloat16)
    lab4 = jax.random.bernoulli(keys[11], 0.5, (B4,)).astype(jnp.float32)
    loss4 = contrastive_loss(q1, q2, lab4, margin=0.75, batch_tile=16)
    jax.block_until_ready(loss4)
    assert jnp.allclose(loss4, _reference(q1, q2, lab4, 0.75), rtol=1e-4, atol=1e-4)

    print("KERNEL_OK")
</pallas_src>

<mosaic_0001>
module attributes {stable_mosaic.version = 11 : i64} {
  func.func @_contrastive_loss_kernel(%arg0: i32, %arg1: i32, %arg2: memref<8x32xf32, #tpu.memory_space<vmem>>, %arg3: memref<8x32xf32, #tpu.memory_space<vmem>>, %arg4: memref<8x1xf32, #tpu.memory_space<vmem>>, %arg5: memref<8x128xf32, #tpu.memory_space<vmem>>, %arg6: memref<1x1xf32, #tpu.memory_space<vmem>>) attributes {dimension_semantics = [#tpu.dimension_semantics<parallel>, #tpu.dimension_semantics<arbitrary>], iteration_bounds = array<i64: 1, 1>, scalar_prefetch = 0 : i64, scratch_operands = 1 : i64, tpu.core_type = #tpu.core_type<tc>, window_params = [{transform_indices = @transform_0, window_bounds = array<i64: 8, 32>}, {transform_indices = @transform_1, window_bounds = array<i64: 8, 32>}, {transform_indices = @transform_2, window_bounds = array<i64: 8, 1>}, {transform_indices = @transform_3, window_bounds = array<i64: 8, 128>}]} {
    %c0_i32 = arith.constant 0 : i32
    %0 = arith.cmpi eq, %arg1, %c0_i32 : i32
    %1 = arith.extui %0 : i1 to i32
    %c0_i32_0 = arith.constant 0 : i32
    %2 = arith.cmpi ne, %1, %c0_i32_0 : i32
    scf.if %2 {
      %cst_17 = arith.constant 0.000000e+00 : f32
      %34 = vector.broadcast %cst_17 : f32 to vector<1x1xf32>
      %c0_18 = arith.constant 0 : index
      %c0_19 = arith.constant 0 : index
      %35 = vector.load %arg6[%c0_18, %c0_19] : memref<1x1xf32, #tpu.memory_space<vmem>>, vector<1x1xf32>
      tpu.vector_store %arg6[%c0_18, %c0_19], %34 {strides = array<i32>} : memref<1x1xf32, #tpu.memory_space<vmem>>, vector<1x1xf32>,
    } else {
    }
    %c0 = arith.constant 0 : index
    %c0_1 = arith.constant 0 : index
    %3 = vector.load %arg2[%c0, %c0_1] : memref<8x32xf32, #tpu.memory_space<vmem>>, vector<8x32xf32>
    %c0_2 = arith.constant 0 : index
    %c0_3 = arith.constant 0 : index
    %4 = vector.load %arg3[%c0_2, %c0_3] : memref<8x32xf32, #tpu.memory_space<vmem>>, vector<8x32xf32>
    %c0_4 = arith.constant 0 : index
    %c0_5 = arith.constant 0 : index
    %5 = vector.load %arg4[%c0_4, %c0_5] : memref<8x1xf32, #tpu.memory_space<vmem>>, vector<8x1xf32>
    %6 = arith.subf %3, %4 : vector<8x32xf32>
    %cst = arith.constant 9.99999997E-7 : f32
    %7 = vector.broadcast %cst : f32 to vector<8x32xf32>
    %8 = arith.addf %6, %7 : vector<8x32xf32>
    %9 = arith.mulf %8, %8 : vector<8x32xf32>
    %cst_6 = arith.constant dense<0.000000e+00> : vector<8xf32>
    %10 = vector.multi_reduction <add>, %9, %cst_6 [1] : vector<8x32xf32> to vector<8xf32>
    %11 = vector.shape_cast %10 : vector<8xf32> to vector<8x1xf32>
    %12 = math.sqrt %11 : vector<8x1xf32>
    %cst_7 = arith.constant 1.000000e+00 : f32
    %13 = vector.broadcast %cst_7 : f32 to vector<8x1xf32>
    %14 = arith.subf %13, %12 : vector<8x1xf32>
    %cst_8 = arith.constant 0.000000e+00 : f32
    %15 = vector.broadcast %cst_8 : f32 to vector<8x1xf32>
    %16 = arith.maximumf %14, %15 : vector<8x1xf32>
    %cst_9 = arith.constant 1.000000e+00 : f32
    %17 = vector.broadcast %cst_9 : f32 to vector<8x1xf32>
    %18 = arith.subf %17, %5 : vector<8x1xf32>
    %19 = arith.mulf %18, %11 : vector<8x1xf32>
    %20 = arith.mulf %16, %16 : vector<8x1xf32>
    %21 = arith.mulf %5, %20 : vector<8x1xf32>
    %22 = arith.addf %19, %21 : vector<8x1xf32>
    %c0_10 = arith.constant 0 : index
    %c0_11 = arith.constant 0 : index
    %23 = vector.load %arg6[%c0_10, %c0_11] : memref<1x1xf32, #tpu.memory_space<vmem>>, vector<1x1xf32>
    %24 = vector.shape_cast %22 : vector<8x1xf32> to vector<1x8x1xf32>
    %cst_12 = arith.constant dense<0.000000e+00> : vector<1xf32>
    %25 = vector.multi_reduction <add>, %24, %cst_12 [1, 2] : vector<1x8x1xf32> to vector<1xf32>
    %26 = vector.shape_cast %25 : vector<1xf32> to vector<1x1x1xf32>
    %27 = vector.extract %26[0, 0, 0] : f32 from vector<1x1x1xf32>
    %28 = vector.broadcast %27 : f32 to vector<1x1xf32>
    %29 = arith.addf %23, %28 : vector<1x1xf32>
    %c0_13 = arith.constant 0 : index
    %c0_14 = arith.constant 0 : index
    %30 = vector.load %arg6[%c0_13, %c0_14] : memref<1x1xf32, #tpu.memory_space<vmem>>, vector<1x1xf32>
    tpu.vector_store %arg6[%c0_13, %c0_14], %29 {strides = array<i32>} : memref<1x1xf32, #tpu.memory_space<vmem>>, vector<1x1xf32>,
    %c0_i32_15 = arith.constant 0 : i32
    %31 = arith.cmpi eq, %arg1, %c0_i32_15 : i32
    %32 = arith.extui %31 : i1 to i32
    %c0_i32_16 = arith.constant 0 : i32
    %33 = arith.cmpi ne, %32, %c0_i32_16 : i32
    scf.if %33 {
      %c0_17 = arith.constant 0 : index
      %c0_18 = arith.constant 0 : index
      %34 = vector.load %arg6[%c0_17, %c0_18] : memref<1x1xf32, #tpu.memory_space<vmem>>, vector<1x1xf32>
      %cst_19 = arith.constant 1.250000e-01 : f32
      %35 = vector.broadcast %cst_19 : f32 to vector<1x1xf32>
      %36 = arith.mulf %34, %35 : vector<1x1xf32>
      %37 = vector.shape_cast %36 : vector<1x1xf32> to vector<1x1xf32>
      %38 = vector.broadcast %37 : vector<1x1xf32> to vector<8x128xf32>
      %c0_20 = arith.constant 0 : index
      %c0_21 = arith.constant 0 : index
      %39 = vector.load %arg5[%c0_20, %c0_21] : memref<8x128xf32, #tpu.memory_space<vmem>>, vector<8x128xf32>
      tpu.vector_store %arg5[%c0_20, %c0_21], %38 {strides = array<i32>} : memref<8x128xf32, #tpu.memory_space<vmem>>, vector<8x128xf32>,
    } else {
    }
    return
  }
  func.func @transform_0(%arg0: i32, %arg1: i32) -> (i32, i32) {
    %c1_i32 = arith.constant 1 : i32
    %0 = arith.muli %arg0, %c1_i32 : i32
    %1 = arith.addi %0, %arg1 : i32
    %c0_i32 = arith.constant 0 : i32
    %2 = arith.minsi %1, %c0_i32 : i32
    %c0_i32_0 = arith.constant 0 : i32
    %c0_i32_1 = arith.constant 0 : i32
    return %2, %c0_i32_0 : i32, i32
  }
  func.func @transform_1(%arg0: i32, %arg1: i32) -> (i32, i32) {
    %c1_i32 = arith.constant 1 : i32
    %0 = arith.muli %arg0, %c1_i32 : i32
    %1 = arith.addi %0, %arg1 : i32
    %c0_i32 = arith.constant 0 : i32
    %2 = arith.minsi %1, %c0_i32 : i32
    %c0_i32_0 = arith.constant 0 : i32
    %c0_i32_1 = arith.constant 0 : i32
    return %2, %c0_i32_0 : i32, i32
  }
  func.func @transform_2(%arg0: i32, %arg1: i32) -> (i32, i32) {
    %c1_i32 = arith.constant 1 : i32
    %0 = arith.muli %arg0, %c1_i32 : i32
    %1 = arith.addi %0, %arg1 : i32
    %c0_i32 = arith.constant 0 : i32
    %2 = arith.minsi %1, %c0_i32 : i32
    %c0_i32_0 = arith.constant 0 : i32
    %c0_i32_1 = arith.constant 0 : i32
    return %2, %c0_i32_0 : i32, i32
  }
  func.func @transform_3(%arg0: i32, %arg1: i32) -> (i32, i32) {
    %c0_i32 = arith.constant 0 : i32
    %c0_i32_0 = arith.constant 0 : i32
    return %arg0, %c0_i32 : i32, i32
  }
}

</mosaic_0001>

<bundles_post_ra>
// kernel: tpu_custom_call.1
= control target key start
LH: loop header
LB: loop body
LE: loop exit
PB: predicated region body
PF: predicated region fallthrough
CT: control target
= control target key end

     0   :  { %8 = vsyncpa [#allocation4], 0  ;;  %s271_s0 = inlined_call_operand.vmem [shape: f32[8,32], index: 0, kind: input, shape index: {}]   ;;  %s272_s1 = inlined_call_operand.hbm [shape: f32[8,32], index: 1, kind: input, shape index: {}]   ;;  %s273_s2 = inlined_call_operand.vmem [shape: f32[8,1], index: 2, kind: input, shape index: {}]   ;;  %s274_s3 = inlined_call_operand.hbm [shape: f32[8,128], index: 3, kind: output, shape index: {}]  }
   0x1   :  { %9 = vsyncpa [#allocation5], 0  ;;  %s233_s12 = smov [#allocation3]  }
   0x2   :  { %s33_s13 = sshll.u32 %s233_s12, 4  ;;  %s34_s13 = int_to_ptr.vmem [resolvable:$true] %s33_s13 }
   0x3   :  { %s197_s14 = scalar_lea.vmem %s34_s13, 128  ;;  %p202_p1 = scmp.lt.s32.totalorder %s34_s13, %s34_s13 }
   0x4   :  { %p198_p0 = scmp.ne.s32.totalorder %s34_s13, %s197_s14  ;;  %p203_p2 = scmp.lt.s32.totalorder %s197_s14, %s197_s14 }
   0x6   :  { %p204_p3 = por %p203_p2, %p202_p1 }
   0x8   :  { %p205_p4 = pnand %p204_p3, %p198_p0 }
   0xa   :  { %208 = shalt.err (!%p205_p4)
}
   0xb   :  { %36 = dma.hbm_to_vmem [thread:$0]  %s272_s1, 128, %s34_s13, [#allocation4]  }
   0xc   :  { %229 = dma.done.wait [#allocation4], 128  }
   0xd   :  { %230 = vsyncadd [#allocation4], 4294967168  ;;  %v95_v0 = vld [vmem:[%s271_s0] sm:$0xff]  ;;  %vm101_vm0 = vcmask 261120   ;;  %vm120_vm3 = vcmask 7168   ;;  %vm93_vm4 = vcmask 0   ;;  %v141_v33 = vlaneseq }
   0xe   :  { %v96_v1 = vld [vmem:[#allocation3] sm:$0xff]  ;;  %v234_v21 = vmov 0.0   ;;  %v235_v22 = vmov 0  }
   0xf   :  { %v98_v2 = vsub.f32 %v95_v0, %v96_v1  ;;  %v97_v11 = vld [vmem:[%s273_s2] sm:$0xff]  ;;  %94 = vst.msk [vmem:[#allocation2] sm:$0x1] %vm93_vm4, %v234_v21  ;;  %185 = vset.pattern.permute.xlu1 %v235_v22  ;;  %186 = vset.pattern.permute.xlu0 %v235_v22  ;;  %v142_v34 = vshrl.u32 %v141_v33, 7  ;;  %s236_s2 = smov [#allocation6]  }
  0x10   :  { %v114_v15 = vsub.f32 1.0, %v97_v11  ;;  %s156_s20 = sshll.u32 %s236_s2, 4  ;;  %s157_s20 = int_to_ptr.vmem [resolvable:$true] %s156_s20 }
  0x11   :  { %v99_v3 = vadd.f32 1e-06, %v98_v2  ;;  %v143_v35 = vsub.s32 0, %v142_v34  ;;  %s209_s21 = scalar_lea.vmem %s157_s20, 128  ;;  %p214_p6 = scmp.lt.s32.totalorder %s157_s20, %s157_s20 }
  0x12   :  { %p210_p5 = scmp.ne.s32.totalorder %s157_s20, %s209_s21  ;;  %p215_p7 = scmp.lt.s32.totalorder %s209_s21, %s209_s21 }
  0x13   :  { %v100_v4 = vmul.f32 %v99_v3, %v99_v3 }
  0x14   :  { %p216_p8 = por %p215_p7, %p214_p6 }
  0x15   :  { %v102_v5 = vsel %vm101_vm0, %v100_v4, 0.0 }
  0x16   :  { %103 = vadd.xlane.f32.xlu0 %v102_v5  ;;  %v119_v30 = vld [vmem:[#allocation2] sm:$0x1]  ;;  %p217_p9 = pnand %p216_p8, %p210_p5 }
  0x9f   :  { %v104_v6 = vpop.xlane.xlu0 %103 }
  0xa0   :  { %187 = vrsqrt.f32 %v104_v6  ;;  %vm107_vm1 = vcmp.eq.f32.partialorder %v104_v6, inf  ;;  %v110_v9 = vand.u32 2147483648, %v104_v6  ;;  %vm109_vm2 = vcmp.eq.f32.partialorder %v104_v6, 0.0 }
  0xa1   :  { %v115_v17 = vmul.f32 %v114_v15, %v104_v6 }
  0xad   :  { %v188_v7 = vpop.eup %187 }
  0xae   :  { %v106_v8 = vmul.f32 %v188_v7, %v104_v6 }
  0xb0   :  { %v108_v10 = vsel %vm107_vm1, %v104_v6, %v106_v8 }
  0xb1   :  { %v111_v12 = vsel %vm109_vm2, %v110_v9, %v108_v10 }
  0xb2   :  { %v112_v13 = vsub.f32 1.0, %v111_v12 }
  0xb4   :  { %v113_v14 = vmax.f32 %v112_v13, 0.0 }
  0xb6   :  { %v116_v16 = vmul.f32 %v113_v14, %v113_v14 }
  0xb8   :  { %v117_v18 = vmul.f32 %v116_v16, %v97_v11 }
  0xba   :  { %v118_v19 = vadd.f32 %v117_v18, %v115_v17 }
  0xbc   :  { %v121_v20 = vsel %vm120_vm3, %v118_v19, 0.0 }
  0xbd   :  { %122 = vadd.xlane.f32.xlu0 %v121_v20 }
 0x146   :  { %v123_v23 = vpop.xlane.xlu0 %122 }
 0x147   :  { %v124_v24 = vrot.slane %v123_v23, 4 }
 0x149   :  { %v125_v25 = vadd.f32 %v124_v24, %v123_v23 }
 0x14b   :  { %v126_v26 = vrot.slane %v125_v25, 2 }
 0x14d   :  { %v127_v27 = vadd.f32 %v126_v26, %v125_v25 }
 0x14f   :  { %v128_v28 = vrot.slane %v127_v27, 1 }
 0x151   :  { %v129_v29 = vadd.f32 %v128_v28, %v127_v27 }
 0x153   :  { %179 = vpush %v129_v29 }
 0x184   :  { %s180_s0 = spop %179 }
 0x185   :  { %v131_v31 = vstv %s180_s0 }
 0x186   :  { %v132_v32 = vadd.f32 %v131_v31, %v119_v30 }
 0x188   :  { %134 = vst.msk [vmem:[#allocation2] sm:$0x1] %vm93_vm4, %v132_v32 }
 0x18f   :  { %v138_v36 = vld [vmem:[#allocation2] sm:$0x1] }
 0x190   :  { %v139_v37 = vmul.f32 0.125, %v138_v36 }
 0x192   :  { %v144_v38 = vrot.slane %v139_v37, %v143_v35 }
 0x194   :  { %146 = vperm.xlu1 %185, %v144_v38  }
 0x20f   :  { %v147_v39 = vpop.permute.xlu1 %146 }
 0x210   :  { %149 = vst [vmem:[#allocation6] sm:$0xff] %v147_v39 }
 0x211   :  { %220 = shalt.err (!%p217_p9)
}
 0x212   :  { %159 = dma.vmem_to_hbm [thread:$0]  %s157_s20, 128, %s274_s3, [#allocation5]  }
 0x213   :  { %231 = dma.done.wait [#allocation5], 128  }
 0x214   :  { %232 = vsyncadd [#allocation5], 4294967168 }
 0x215   :  { %163 = vsyncpa [#allocation4], 1 }
 0x216   :  { %164 = vsyncpa [#allocation5], 1 }

</bundles_post_ra>
